<compile_context>
chip_gen: v6e
topology: v6e:2x2x1
jax: 0.10.0
libtpu: 0.0.40
codegen_flags: <defaults>
</compile_context>

<pallas_src>
import functools

import jax
import jax.numpy as jnp
from jax import lax
from jax.experimental import pallas as pl
from jax.experimental.pallas import tpu as pltpu
import numpy as np


def _style_loss_kernel(x_ref, target_ref, gram_ref, loss_ref, *, scale, inv_mm):
    k = pl.program_id(0)

    @pl.when(k == 0)
    def _():
        gram_ref[...] = jnp.zeros_like(gram_ref)

    # Partial gram accumulation over this K-tile:  gram += Xk @ Xk.T
    # dot_general contracts dim 1 of both operands -> no explicit transpose
    # (keeps the XLU slot free; MXU push overlaps with the input DMA).
    xk = x_ref[...]                                          # (M, tk) f32
    gram_ref[...] += lax.dot_general(
        xk, xk,
        dimension_numbers=(((1,), (1,)), ((), ())),
        preferred_element_type=jnp.float32)

    @pl.when(k == pl.num_programs(0) - 1)
    def _():
        # G = (X @ X.T / (a*b*c*d)) * weight  -- scale in place, then MSE.
        g = gram_ref[...] * scale
        gram_ref[...] = g
        diff = g - target_ref[...]
        loss_ref[0, 0] = jnp.sum(diff * diff) * inv_mm


def _choose_k_tiling(M, K, input_budget_bytes=8 << 20):
    """Pick a K-tile (multiple of 128) so the double-buffered (M, tk) f32 input
    tile stays within `input_budget_bytes`, and the padded K it implies."""
    k128 = pl.cdiv(K, 128) * 128
    # 2 pipeline buffers * M * tk * 4 bytes <= budget
    max_tk = (input_budget_bytes // (2 * M * 4)) // 128 * 128
    tk = int(max(128, min(max_tk, k128)))
    k_pad = pl.cdiv(K, tk) * tk
    return tk, int(k_pad)


def gram_style_loss(x, target, weight):
    """Returns (out, gram, loss) matching Style_Loss.forward.

    x:      (a, b, c, d) float32, NCHW
    target: (a*b, a*b) float32  (precomputed style gram * weight)
    weight: python float
    """
    a, b, c, d = x.shape
    M = a * b
    K = c * d
    norm = float(a * b * c * d)

    feat = x.reshape(M, K).astype(jnp.float32)       # row-major, == torch .view()

    # Large K tiles (memory-bound kernel); pad K with zeros so every tile is full.
    # Zero columns contribute nothing to X @ X.T, so this is numerically exact.
    tk, k_pad = _choose_k_tiling(M, K)
    if k_pad != K:
        feat = jnp.pad(feat, ((0, 0), (0, k_pad - K)))
    grid = (k_pad // tk,)

    # VMEM accounting: double-buffered input tile + resident gram output + target.
    vmem_need = 2 * M * tk * 4 + 4 * M * M * 4 + (2 << 20)
    vmem_limit = int(min(max(vmem_need, 16 << 20), 56 << 20))

    kernel = functools.partial(
        _style_loss_kernel,
        scale=float(weight) / norm,
        inv_mm=1.0 / float(M * M))

    gram, loss = pl.pallas_call(
        kernel,
        out_shape=(
            jax.ShapeDtypeStruct((M, M), jnp.float32),    # gram * weight
            jax.ShapeDtypeStruct((1, 1), jnp.float32),    # MSE loss scalar
        ),
        grid_spec=pltpu.PrefetchScalarGridSpec(
            num_scalar_prefetch=0,
            grid=grid,
            in_specs=[
                pl.BlockSpec((M, tk), lambda k: (0, k)),     # feature K-tile
                pl.BlockSpec((M, M), lambda k: (0, 0)),      # target (resident)
            ],
            out_specs=[
                pl.BlockSpec((M, M), lambda k: (0, 0)),      # gram: resident accumulator
                pl.BlockSpec((1, 1), lambda k: (0, 0),
                             memory_space=pltpu.SMEM),
            ],
        ),
        compiler_params=pltpu.CompilerParams(
            dimension_semantics=("arbitrary",),              # K is a reduction axis
            vmem_limit_bytes=vmem_limit),
    )(feat, target)

    out = x  # torch's input.clone(): forward output is the (unmodified) input
    return out, gram, loss[0, 0]


def _gram_ref(x):
    a, b, c, d = x.shape
    f = x.reshape(a * b, c * d).astype(jnp.float32)
    return (f @ f.T) / float(a * b * c * d)


if __name__ == "__main__":
    key = jax.random.PRNGKey(0)
    k_in, k_style = jax.random.split(key)

    # Small shapes consistent with the module: NCHW feature map.
    a, b, c, d = 2, 4, 16, 16
    weight = 1000.0

    x = jax.random.normal(k_in, (a, b, c, d), dtype=jnp.float32)

    # "target" parameter built the way Style_Loss.__init__ does:
    # gram of a detached style feature map, scaled by weight (setup glue in JAX).
    style_feat = jax.random.normal(k_style, (a, b, c, d), dtype=jnp.float32)
    target = _gram_ref(style_feat) * weight               # (a*b, a*b)

    out, gram, loss = gram_style_loss(x, target, weight)
    jax.block_until_ready((out, gram, loss))

    # Sanity check against a pure-JAX reference of the PyTorch semantics.
    gram_ref = _gram_ref(x) * weight
    loss_ref = jnp.mean((gram_ref - target) ** 2)
    assert np.allclose(np.asarray(out), np.asarray(x)), "out must equal input"
    assert np.allclose(np.asarray(gram), np.asarray(gram_ref), rtol=1e-5, atol=1e-4)
    assert np.allclose(np.asarray(loss), np.asarray(loss_ref), rtol=1e-5, atol=1e-3)

    print("KERNEL_OK")
</pallas_src>

<mosaic_0001>
module attributes {stable_mosaic.version = 11 : i64} {
  func.func @_style_loss_kernel(%arg0: i32, %arg1: memref<8x256xf32, #tpu.memory_space<vmem>>, %arg2: memref<8x8xf32, #tpu.memory_space<vmem>>, %arg3: memref<8x8xf32, #tpu.memory_space<vmem>>, %arg4: memref<1x1xf32, #tpu.memory_space<smem>>) attributes {dimension_semantics = [#tpu.dimension_semantics<arbitrary>], iteration_bounds = array<i64: 1>, scalar_prefetch = 0 : i64, scratch_operands = 0 : i64, tpu.core_type = #tpu.core_type<tc>, window_params = [{transform_indices = @transform_0, window_bounds = array<i64: 8, 256>}, {pipeline_mode = #tpu.pipeline_mode<synchronous>, transform_indices = @transform_1, window_bounds = array<i64: 8, 8>}, {pipeline_mode = #tpu.pipeline_mode<synchronous>, transform_indices = @transform_2, window_bounds = array<i64: 8, 8>}, {transform_indices = @transform_3, window_bounds = array<i64: 1, 1>}]} {
    %c0_i32 = arith.constant 0 : i32
    %0 = arith.cmpi eq, %arg0, %c0_i32 : i32
    %1 = arith.extui %0 : i1 to i32
    %c0_i32_0 = arith.constant 0 : i32
    %2 = arith.cmpi ne, %1, %c0_i32_0 : i32
    scf.if %2 {
      %cst_8 = arith.constant 0.000000e+00 : f32
      %11 = vector.broadcast %cst_8 : f32 to vector<8x8xf32>
      %c0_9 = arith.constant 0 : index
      %c0_10 = arith.constant 0 : index
      %12 = vector.load %arg3[%c0_9, %c0_10] : memref<8x8xf32, #tpu.memory_space<vmem>>, vector<8x8xf32>
      tpu.vector_store %arg3[%c0_9, %c0_10], %11 {strides = array<i32>} : memref<8x8xf32, #tpu.memory_space<vmem>>, vector<8x8xf32>,
    } else {
    }
    %c0 = arith.constant 0 : index
    %c0_1 = arith.constant 0 : index
    %3 = vector.load %arg1[%c0, %c0_1] : memref<8x256xf32, #tpu.memory_space<vmem>>, vector<8x256xf32>
    %c0_2 = arith.constant 0 : index
    %c0_3 = arith.constant 0 : index
    %4 = vector.load %arg3[%c0_2, %c0_3] : memref<8x8xf32, #tpu.memory_space<vmem>>, vector<8x8xf32>
    %cst = arith.constant dense<0.000000e+00> : vector<8x8xf32>
    %5 = tpu.matmul %3, %3, %cst {dimension_numbers = #tpu.dot_dimension_numbers<[1], [1], [0], [0], [0, 0, 1, 0], [], []>} : vector<8x256xf32>, vector<8x256xf32>, vector<8x8xf32> -> vector<8x8xf32>
    %6 = arith.addf %4, %5 : vector<8x8xf32>
    %c0_4 = arith.constant 0 : index
    %c0_5 = arith.constant 0 : index
    %7 = vector.load %arg3[%c0_4, %c0_5] : memref<8x8xf32, #tpu.memory_space<vmem>>, vector<8x8xf32>
    tpu.vector_store %arg3[%c0_4, %c0_5], %6 {strides = array<i32>} : memref<8x8xf32, #tpu.memory_space<vmem>>, vector<8x8xf32>,
    %c0_i32_6 = arith.constant 0 : i32
    %8 = arith.cmpi eq, %arg0, %c0_i32_6 : i32
    %9 = arith.extui %8 : i1 to i32
    %c0_i32_7 = arith.constant 0 : i32
    %10 = arith.cmpi ne, %9, %c0_i32_7 : i32
    scf.if %10 {
      %c0_8 = arith.constant 0 : index
      %c0_9 = arith.constant 0 : index
      %11 = vector.load %arg3[%c0_8, %c0_9] : memref<8x8xf32, #tpu.memory_space<vmem>>, vector<8x8xf32>
      %cst_10 = arith.constant 0.48828125 : f32
      %12 = vector.broadcast %cst_10 : f32 to vector<8x8xf32>
      %13 = arith.mulf %11, %12 : vector<8x8xf32>
      %c0_11 = arith.constant 0 : index
      %c0_12 = arith.constant 0 : index
      %14 = vector.load %arg3[%c0_11, %c0_12] : memref<8x8xf32, #tpu.memory_space<vmem>>, vector<8x8xf32>
      tpu.vector_store %arg3[%c0_11, %c0_12], %13 {strides = array<i32>} : memref<8x8xf32, #tpu.memory_space<vmem>>, vector<8x8xf32>,
      %c0_13 = arith.constant 0 : index
      %c0_14 = arith.constant 0 : index
      %15 = vector.load %arg2[%c0_13, %c0_14] : memref<8x8xf32, #tpu.memory_space<vmem>>, vector<8x8xf32>
      %16 = arith.subf %13, %15 : vector<8x8xf32>
      %17 = arith.mulf %16, %16 : vector<8x8xf32>
      %18 = vector.shape_cast %17 : vector<8x8xf32> to vector<1x8x8xf32>
      %cst_15 = arith.constant dense<0.000000e+00> : vector<1xf32>
      %19 = vector.multi_reduction <add>, %18, %cst_15 [1, 2] : vector<1x8x8xf32> to vector<1xf32>
      %20 = vector.shape_cast %19 : vector<1xf32> to vector<1x1x1xf32>
      %21 = vector.extract %20[0, 0, 0] : f32 from vector<1x1x1xf32>
      %cst_16 = arith.constant 1.562500e-02 : f32
      %22 = arith.mulf %21, %cst_16 : f32
      %c0_17 = arith.constant 0 : index
      %c0_18 = arith.constant 0 : index
      %23 = memref.load %arg4[%c0_17, %c0_18] : memref<1x1xf32, #tpu.memory_space<smem>>
      memref.store %22, %arg4[%c0_17, %c0_18] : memref<1x1xf32, #tpu.memory_space<smem>>
    } else {
    }
    return
  }
  func.func @transform_0(%arg0: i32) -> (i32, i32) {
    %c0_i32 = arith.constant 0 : i32
    %c0_i32_0 = arith.constant 0 : i32
    return %c0_i32, %arg0 : i32, i32
  }
  func.func @transform_1(%arg0: i32) -> (i32, i32) {
    %c0_i32 = arith.constant 0 : i32
    %c0_i32_0 = arith.constant 0 : i32
    %c0_i32_1 = arith.constant 0 : i32
    return %c0_i32, %c0_i32_0 : i32, i32
  }
  func.func @transform_2(%arg0: i32) -> (i32, i32) {
    %c0_i32 = arith.constant 0 : i32
    %c0_i32_0 = arith.constant 0 : i32
    %c0_i32_1 = arith.constant 0 : i32
    return %c0_i32, %c0_i32_0 : i32, i32
  }
  func.func @transform_3(%arg0: i32) -> (i32, i32) {
    %c0_i32 = arith.constant 0 : i32
    %c0_i32_0 = arith.constant 0 : i32
    %c0_i32_1 = arith.constant 0 : i32
    return %c0_i32, %c0_i32_0 : i32, i32
  }
}

</mosaic_0001>

<bundles_post_ra>
// kernel: tpu_custom_call.1
= control target key start
LH: loop header
LB: loop body
LE: loop exit
PB: predicated region body
PF: predicated region fallthrough
CT: control target
= control target key end

     0   :  { %9 = vsyncpa [#allocation3], 0  ;;  %s296_s0 = inlined_call_operand.hbm [shape: f32[8,256], index: 0, kind: input, shape index: {}]   ;;  %s297_s1 = inlined_call_operand.hbm [shape: f32[8,8], index: 1, kind: input, shape index: {}]   ;;  %s298_s2 = inlined_call_operand.hbm [shape: f32[8,8], index: 2, kind: output, shape index: {0}]   ;;  %s299_s3 = inlined_call_operand.hbm [shape: f32[1,1], index: 3, kind: output, shape index: {1}]  }
   0x1   :  { %10 = vsyncpa [#allocation7], 0 }
   0x2   :  { %11 = vsyncpa [#allocation4], 0 }
   0x3   :  { %12 = vsyncpa [#allocation5], 0  ;;  %s255_s12 = smov [#allocation2]   ;;  %s256_s14 = smov [#allocation6]  }
   0x4   :  { %s19_s13 = sshll.u32 %s255_s12, 4  ;;  %s29_s15 = sshll.u32 %s256_s14, 4  ;;  %s20_s13 = int_to_ptr.vmem [resolvable:$true] %s19_s13  ;;  %s30_s15 = int_to_ptr.vmem [resolvable:$true] %s29_s15 }
   0x5   :  { %s187_s16 = scalar_lea.vmem %s20_s13, 256  ;;  %p192_p1 = scmp.lt.s32.totalorder %s20_s13, %s20_s13 }
   0x6   :  { %p188_p0 = scmp.ne.s32.totalorder %s20_s13, %s187_s16  ;;  %p193_p2 = scmp.lt.s32.totalorder %s187_s16, %s187_s16 }
   0x8   :  { %p194_p3 = por %p193_p2, %p192_p1 }
   0xa   :  { %p195_p4 = pnand %p194_p3, %p188_p0 }
   0xc   :  { %198 = shalt.err (!%p195_p4)
}
   0xd   :  { %22 = dma.hbm_to_vmem [thread:$0]  %s296_s0, 256, %s20_s13, [#allocation3]  }
   0xe   :  { %s207_s19 = scalar_lea.vmem %s30_s15, 128  ;;  %p212_p6 = scmp.lt.s32.totalorder %s30_s15, %s30_s15 }
   0xf   :  { %p208_p5 = scmp.ne.s32.totalorder %s30_s15, %s207_s19  ;;  %p213_p7 = scmp.lt.s32.totalorder %s207_s19, %s207_s19 }
  0x11   :  { %p214_p8 = por %p213_p7, %p212_p6 }
  0x13   :  { %p215_p9 = pnand %p214_p8, %p208_p5 }
  0x15   :  { %218 = shalt.err (!%p215_p9)
}
  0x16   :  { %32 = dma.hbm_to_vmem [thread:$0]  %s297_s1, 128, %s30_s15, [#allocation7]  }
  0x17   :  { %247 = dma.done.wait [#allocation3], 256  }
  0x18   :  { %248 = vsyncadd [#allocation3], 4294967040 }
  0x19   :  { %249 = dma.done.wait [#allocation7], 128  }
  0x1a   :  { %250 = vsyncadd [#allocation7], 4294967168  ;;  %vm43_vm0 = vcmask 64512   ;;  %v257_v0 = vmov 0.0   ;;  %v46_v1 = vld [vmem:[#allocation2 + $0x8] sm:$0xff]  ;;  %v45_v2 = vld [vmem:[#allocation2] sm:$0xff] }
  0x1b   :  { %44 = vst.msk [vmem:[#allocation8] sm:$0xff] %vm43_vm0, %v257_v0  ;;  %78 = vmatprep.subr.mxu0 %v46_v1  ;;  %112 = vmatprep.mubr.f32.mxu0 %v46_v1  ;;  %v127_v8 = vld [vmem:[#allocation6] sm:$0xff]  ;;  %s258_s0 = smov [#allocation8]  }
  0x1c   :  { %79 = vmatpush1.xpose.msra.mxu0 %v45_v2  ;;  %s149_s1 = sshll.u32 %s258_s0, 4  ;;  %s150_s1 = int_to_ptr.vmem [resolvable:$true] %s149_s1 }
  0x1d   :  { %s219_s22 = scalar_lea.vmem %s150_s1, 128  ;;  %p224_p11 = scmp.lt.s32.totalorder %s150_s1, %s150_s1 }
  0x1e   :  { %p220_p10 = scmp.ne.s32.totalorder %s150_s1, %s219_s22  ;;  %p225_p12 = scmp.lt.s32.totalorder %s219_s22, %s219_s22 }
  0x1f   :  { %113 = vmatmul.mubr.f32.vlgmr.msra.gmra.mxu0 %v45_v2 }
  0x20   :  { %p226_p13 = por %p225_p12, %p224_p11 }
  0x22   :  { %v47_v3 = vld [vmem:[#allocation8] sm:$0xff]  ;;  %p227_p0 = pnand %p226_p13, %p220_p10 }
  0xdf   :  { %v114_v4 = vpop.f32.mrf.mxu0 }
  0xe0   :  { %v118_v5 = vadd.f32 %v114_v4, %v47_v3 }
  0xe1   :  { %v116_v6 = vpop.f32.mrf.mxu0 }
  0xe2   :  { %120 = vst.msk [vmem:[#allocation8] sm:$0xff] %vm43_vm0, %v118_v5 }
  0xe9   :  { %v124_v7 = vld [vmem:[#allocation8] sm:$0xff] }
  0xea   :  { %v125_v9 = vmul.f32 0.48828125, %v124_v7 }
  0xec   :  { %v128_v10 = vsub.f32 %v125_v9, %v127_v8  ;;  %126 = vst.msk [vmem:[#allocation8] sm:$0xff] %vm43_vm0, %v125_v9 }
  0xee   :  { %v129_v11 = vmul.f32 %v128_v10, %v128_v10 }
  0xf0   :  { %v130_v12 = vsel %vm43_vm0, %v129_v11, 0.0 }
  0xf1   :  { %131 = vadd.xlane.f32.xlu0 %v130_v12 }
  0xf2   :  { %230 = shalt.err (!%p227_p0)
}
  0xf3   :  { %152 = dma.vmem_to_hbm [thread:$0]  %s150_s1, 128, %s298_s2, [#allocation4]  }
  0xf4   :  { %s259_s27 = smov [#allocation9]  }
 0x17a   :  { %v132_v13 = vpop.xlane.xlu0 %131 }
 0x17b   :  { %v133_v14 = vrot.slane %v132_v13, 4 }
 0x17d   :  { %v134_v15 = vadd.f32 %v133_v14, %v132_v13 }
 0x17f   :  { %v135_v16 = vrot.slane %v134_v15, 2 }
 0x181   :  { %v136_v17 = vadd.f32 %v135_v16, %v134_v15 }
 0x183   :  { %v137_v18 = vrot.slane %v136_v17, 1 }
 0x185   :  { %v138_v19 = vadd.f32 %v137_v18, %v136_v17 }
 0x187   :  { %172 = vpush %v138_v19 }
 0x1b8   :  { %s173_s25 = spop %172 }
 0x1b9   :  { %s140_s26 = smul.f32 0.015625, %s173_s25 }
 0x1bb   :  { %142 = sst [smem:[#allocation9]] %s140_s26 }
 0x1bc   :  { %160 = dma.smem_to_hbm %s259_s27, 16, %s299_s3, [#allocation5]  }
 0x1bd   :  { %251 = dma.done.wait [#allocation4], 128  }
 0x1be   :  { %252 = vsyncadd [#allocation4], 4294967168 }
 0x1bf   :  { %253 = dma.done.wait [#allocation5], 16  }
 0x1c0   :  { %254 = vsyncadd [#allocation5], 4294967280 }
 0x1c1   :  { %167 = sfence }
 0x1c2   :  { %168 = vsyncpa [#allocation3], 1 }
 0x1c3   :  { %169 = vsyncpa [#allocation7], 1 }
 0x1c4   :  { %170 = vsyncpa [#allocation4], 1 }
 0x1c5   :  { %171 = vsyncpa [#allocation5], 1 }

</bundles_post_ra>
